<compile_context>
chip_gen: v7x
topology: tpu7x:2x2x1
jax: 0.10.0
libtpu: 0.0.40
codegen_flags: <defaults>
</compile_context>

<pallas_src>
import functools

import jax
import jax.numpy as jnp
from jax.experimental import pallas as pl
from jax.experimental.pallas import tpu as pltpu


def _rup(a, m):
    return -(-a // m) * m


def _encoder_kernel(x_ref, w_ref, b_ref, o_ref, pooled_ref, *,
                    inv_s, seq_len, ts, needs_mask):
    """One (batch-tile, seq-tile) grid step.

    x_ref:      (tm, ts, D_in)  native x dtype -- seq on sublanes, D_in on lanes
    w_ref:      (D_in, Np)      f32, VMEM-resident across the whole grid
    b_ref:      (1, Np)         f32, VMEM-resident
    o_ref:      (tm, Np)        f32, resident across the seq axis
    pooled_ref: (tm, D_in)      f32 VMEM accumulator for the sequence sum
    """
    s_idx = pl.program_id(1)

    @pl.when(s_idx == 0)
    def _init():
        pooled_ref[...] = jnp.zeros_like(pooled_ref)

    x = x_ref[...]
    if needs_mask:
        # Only the last sequence tile is partial; mask rows past the true S.
        pos = jax.lax.broadcasted_iota(jnp.int32, (x.shape[1], x.shape[2]), 0)
        valid = (pos + s_idx * ts) < seq_len
        x = jnp.where(valid[None, :, :], x, jnp.zeros_like(x))

    # Pure VPU sublane reduction with f32 accumulation (no upcast copy of the
    # whole tile); the MXU slot stays idle so this runs at the HBM roofline.
    pooled_ref[...] += jnp.sum(x, axis=1, dtype=jnp.float32)

    @pl.when(s_idx == pl.num_programs(1) - 1)
    def _finalize():
        pooled = pooled_ref[...] * inv_s                        # (tm, D_in) f32
        out = jnp.dot(pooled, w_ref[...],
                      preferred_element_type=jnp.float32) + b_ref[...]
        o_ref[...] = jnp.tanh(out).astype(o_ref.dtype)


def sentence_encoder_pallas(x, w, b):
    """tanh(mean_s(x) @ W + b) as a single tiled Pallas TPU kernel.

    x: (B, S, D_in)   (read once, native dtype -- no wrapper pad/cast copy)
    w: (D_in, D_out)
    b: (1, D_out)
    returns: (B, D_out) float32
    """
    B, S, D_in = x.shape
    K, D_out = w.shape
    assert K == D_in and b.shape == (1, D_out)

    # Only the tiny W / bias get padded (lane-dense output columns).
    Np = _rup(D_out, 128)
    wp = jnp.pad(w, ((0, 0), (0, Np - D_out))).astype(jnp.float32)
    bp = jnp.pad(b, ((0, 0), (0, Np - D_out))).astype(jnp.float32)

    # ---- per-generation VMEM budget --------------------------------------
    try:
        vmem_cap = int(pltpu.get_tpu_info().vmem_capacity_bytes)
    except Exception:
        vmem_cap = 64 * 1024 * 1024          # v7x floor (v5e/v6e have 128 MiB)
    vmem_limit = min(int(vmem_cap * 0.75), 100 * 1024 * 1024)

    # ---- batch tile -------------------------------------------------------
    if B <= 8:
        tm = B                                # full-extent block, no padding
    else:
        bp8 = _rup(B, 8)
        tm = min(128, bp8)
        # v7x megacore: prefer >= 2 parallel batch tiles when possible.
        while tm > 8 and -(-bp8 // tm) < 2:
            tm //= 2
    # TODO(synk): for tiny batches (<= 8 rows) a parallel split of the sequence
    # reduction would be needed to keep both v7x TensorCores busy.

    # ---- sequence tile from the VMEM budget -------------------------------
    x_item = jnp.dtype(x.dtype).itemsize
    resident = (D_in * Np * 4                 # W (f32, resident)
                + Np * 4                      # bias
                + tm * D_in * 4               # pooled accumulator
                + 2 * tm * Np * 4)            # double-buffered output tile
    budget_x = vmem_limit - resident - 2 * 1024 * 1024
    ts_cap = max(8, budget_x // (2 * tm * D_in * x_item))   # double-buffered x
    ts = max(8, min(2048, (ts_cap // 8) * 8))
    if ts >= S:
        ts = S                               # single full-extent sequence tile
    num_s = -(-S // ts)
    needs_mask = (S % ts) != 0
    # TODO(synk): very large D_out (W no longer VMEM-resident) would need an
    # extra D_out tiling axis; not needed at these hidden sizes.

    Bo = _rup(B, tm)
    grid = (Bo // tm, num_s)

    kernel = functools.partial(_encoder_kernel, inv_s=float(1.0 / S),
                               seq_len=S, ts=ts, needs_mask=needs_mask)

    out = pl.pallas_call(
        kernel,
        out_shape=jax.ShapeDtypeStruct((Bo, Np), jnp.float32),
        grid_spec=pltpu.PrefetchScalarGridSpec(
            num_scalar_prefetch=0,
            grid=grid,
            in_specs=[
                # x: streamed once over the sequence (reduction) axis; last dim
                # is the full D_in (exempt from the 128-multiple rule).
                pl.BlockSpec((tm, ts, D_in), lambda i, s: (i, s, 0)),
                # W and bias: constant index_map -> loaded once, VMEM-resident.
                pl.BlockSpec((D_in, Np), lambda i, s: (0, 0)),
                pl.BlockSpec((1, Np), lambda i, s: (0, 0)),
            ],
            out_specs=pl.BlockSpec((tm, Np), lambda i, s: (i, 0)),
            scratch_shapes=[pltpu.VMEM((tm, D_in), jnp.float32)],
        ),
        compiler_params=pltpu.CompilerParams(
            dimension_semantics=("parallel", "arbitrary"),
            vmem_limit_bytes=int(vmem_limit),
        ),
    )(x, wp, bp)

    return out[:B, :D_out]


class BaseREModelPallas:
    """JAX/Pallas analogue of BaseREModel.

    Mirrors the PyTorch framework class: holds the sentence encoder
    (nn.DataParallel is a pure forwarding wrapper on a single device, so it is
    a no-op here) and keeps forward(x, y) abstract.
    """

    def __init__(self, encoder_params):
        # self.sentence_encoder = nn.DataParallel(sentence_encoder)
        self._w, self._b = encoder_params

    def encode(self, x):
        """The sentence_encoder forward path (Pallas kernel)."""
        return sentence_encoder_pallas(x, self._w, self._b)

    def forward(self, x, y):
        # TODO(synk): BaseREModel.forward is abstract in the reference
        # (raises NotImplementedError); subclasses define the RE head.
        raise NotImplementedError


if __name__ == "__main__":
    # Small deterministic shapes: batch=2, seq=8, hidden=32.
    B, S, D_in, D_out = 2, 8, 32, 32
    key = jax.random.PRNGKey(0)
    kx, kw, kb = jax.random.split(key, 3)

    x = jax.random.normal(kx, (B, S, D_in), dtype=jnp.float32)
    w = jax.random.normal(kw, (D_in, D_out), dtype=jnp.float32) * 0.1
    b = jax.random.normal(kb, (1, D_out), dtype=jnp.float32) * 0.01

    model = BaseREModelPallas((w, b))

    # Pure-JAX reference of the same encoder.
    ref = jnp.tanh(jnp.mean(jnp.einsum("bsd,de->bse", x, w), axis=1) + b)

    out = jax.block_until_ready(model.encode(x))
    assert out.shape == (B, D_out)
    assert jnp.allclose(out, ref, atol=1e-5, rtol=1e-5)

    print("KERNEL_OK")
</pallas_src>

<mosaic_0001>
module attributes {stable_mosaic.version = 11 : i64} {
  func.func @_encoder_kernel(%arg0: i32, %arg1: i32, %arg2: memref<2x8x32xf32, #tpu.memory_space<vmem>>, %arg3: memref<32x128xf32, #tpu.memory_space<vmem>>, %arg4: memref<1x128xf32, #tpu.memory_space<vmem>>, %arg5: memref<2x128xf32, #tpu.memory_space<vmem>>, %arg6: memref<2x32xf32, #tpu.memory_space<vmem>>) attributes {dimension_semantics = [#tpu.dimension_semantics<parallel>, #tpu.dimension_semantics<arbitrary>], iteration_bounds = array<i64: 1, 1>, scalar_prefetch = 0 : i64, scratch_operands = 1 : i64, tpu.core_type = #tpu.core_type<tc>, window_params = [{transform_indices = @transform_0, window_bounds = array<i64: 2, 8, 32>}, {pipeline_mode = #tpu.pipeline_mode<synchronous>, transform_indices = @transform_1, window_bounds = array<i64: 32, 128>}, {pipeline_mode = #tpu.pipeline_mode<synchronous>, transform_indices = @transform_2, window_bounds = array<i64: 1, 128>}, {transform_indices = @transform_3, window_bounds = array<i64: 2, 128>}]} {
    %c0_i32 = arith.constant 0 : i32
    %0 = arith.cmpi eq, %arg1, %c0_i32 : i32
    %1 = arith.extui %0 : i1 to i32
    %c0_i32_0 = arith.constant 0 : i32
    %2 = arith.cmpi ne, %1, %c0_i32_0 : i32
    scf.if %2 {
      %cst_9 = arith.constant 0.000000e+00 : f32
      %11 = vector.broadcast %cst_9 : f32 to vector<2x32xf32>
      %c0_10 = arith.constant 0 : index
      %c0_11 = arith.constant 0 : index
      %12 = vector.load %arg6[%c0_10, %c0_11] : memref<2x32xf32, #tpu.memory_space<vmem>>, vector<2x32xf32>
      tpu.vector_store %arg6[%c0_10, %c0_11], %11 {strides = array<i32>} : memref<2x32xf32, #tpu.memory_space<vmem>>, vector<2x32xf32>,
    } else {
    }
    %c0 = arith.constant 0 : index
    %c0_1 = arith.constant 0 : index
    %c0_2 = arith.constant 0 : index
    %3 = vector.load %arg2[%c0, %c0_1, %c0_2] : memref<2x8x32xf32, #tpu.memory_space<vmem>>, vector<2x8x32xf32>
    %c0_3 = arith.constant 0 : index
    %c0_4 = arith.constant 0 : index
    %4 = vector.load %arg6[%c0_3, %c0_4] : memref<2x32xf32, #tpu.memory_space<vmem>>, vector<2x32xf32>
    %cst = arith.constant dense<0.000000e+00> : vector<2x32xf32>
    %5 = vector.multi_reduction <add>, %3, %cst [1] : vector<2x8x32xf32> to vector<2x32xf32>
    %6 = arith.addf %4, %5 : vector<2x32xf32>
    %c0_5 = arith.constant 0 : index
    %c0_6 = arith.constant 0 : index
    %7 = vector.load %arg6[%c0_5, %c0_6] : memref<2x32xf32, #tpu.memory_space<vmem>>, vector<2x32xf32>
    tpu.vector_store %arg6[%c0_5, %c0_6], %6 {strides = array<i32>} : memref<2x32xf32, #tpu.memory_space<vmem>>, vector<2x32xf32>,
    %c0_i32_7 = arith.constant 0 : i32
    %8 = arith.cmpi eq, %arg1, %c0_i32_7 : i32
    %9 = arith.extui %8 : i1 to i32
    %c0_i32_8 = arith.constant 0 : i32
    %10 = arith.cmpi ne, %9, %c0_i32_8 : i32
    scf.if %10 {
      %c0_9 = arith.constant 0 : index
      %c0_10 = arith.constant 0 : index
      %11 = vector.load %arg6[%c0_9, %c0_10] : memref<2x32xf32, #tpu.memory_space<vmem>>, vector<2x32xf32>
      %cst_11 = arith.constant 1.250000e-01 : f32
      %12 = vector.broadcast %cst_11 : f32 to vector<2x32xf32>
      %13 = arith.mulf %11, %12 : vector<2x32xf32>
      %c0_12 = arith.constant 0 : index
      %c0_13 = arith.constant 0 : index
      %14 = vector.load %arg3[%c0_12, %c0_13] : memref<32x128xf32, #tpu.memory_space<vmem>>, vector<32x128xf32>
      %cst_14 = arith.constant dense<0.000000e+00> : vector<2x128xf32>
      %15 = tpu.matmul %13, %14, %cst_14 {dimension_numbers = #tpu.dot_dimension_numbers<[1], [0], [0], [1], [0, 0, 1, 1], [], []>} : vector<2x32xf32>, vector<32x128xf32>, vector<2x128xf32> -> vector<2x128xf32>
      %c0_15 = arith.constant 0 : index
      %c0_16 = arith.constant 0 : index
      %16 = vector.load %arg4[%c0_15, %c0_16] : memref<1x128xf32, #tpu.memory_space<vmem>>, vector<1x128xf32>
      %17 = vector.broadcast %16 : vector<1x128xf32> to vector<2x128xf32>
      %18 = arith.addf %15, %17 : vector<2x128xf32>
      %19 = math.tanh %18 : vector<2x128xf32>
      %c0_17 = arith.constant 0 : index
      %c0_18 = arith.constant 0 : index
      %20 = vector.load %arg5[%c0_17, %c0_18] : memref<2x128xf32, #tpu.memory_space<vmem>>, vector<2x128xf32>
      tpu.vector_store %arg5[%c0_17, %c0_18], %19 {strides = array<i32>} : memref<2x128xf32, #tpu.memory_space<vmem>>, vector<2x128xf32>,
    } else {
    }
    return
  }
  func.func @transform_0(%arg0: i32, %arg1: i32) -> (i32, i32, i32) {
    %c0_i32 = arith.constant 0 : i32
    %c0_i32_0 = arith.constant 0 : i32
    return %arg0, %arg1, %c0_i32 : i32, i32, i32
  }
  func.func @transform_1(%arg0: i32, %arg1: i32) -> (i32, i32) {
    %c0_i32 = arith.constant 0 : i32
    %c0_i32_0 = arith.constant 0 : i32
    %c0_i32_1 = arith.constant 0 : i32
    return %c0_i32, %c0_i32_0 : i32, i32
  }
  func.func @transform_2(%arg0: i32, %arg1: i32) -> (i32, i32) {
    %c0_i32 = arith.constant 0 : i32
    %c0_i32_0 = arith.constant 0 : i32
    %c0_i32_1 = arith.constant 0 : i32
    return %c0_i32, %c0_i32_0 : i32, i32
  }
  func.func @transform_3(%arg0: i32, %arg1: i32) -> (i32, i32) {
    %c0_i32 = arith.constant 0 : i32
    %c0_i32_0 = arith.constant 0 : i32
    return %arg0, %c0_i32 : i32, i32
  }
}

</mosaic_0001>

<bundles_post_ra>
// kernel: tpu_custom_call.1
= control target key start
LH: loop header
LB: loop body
LE: loop exit
PB: predicated region body
PF: predicated region fallthrough
CT: control target
= control target key end

     0   :  { %8 = vsyncpa [#allocation4], 0  ;;  %s360_s0 = inlined_call_operand.hbm [shape: f32[2,8,32], index: 0, kind: input, shape index: {}]   ;;  %s361_s1 = inlined_call_operand.hbm [shape: f32[32,128], index: 1, kind: input, shape index: {}]   ;;  %s362_s2 = inlined_call_operand.vmem [shape: f32[1,128], index: 2, kind: input, shape index: {}]   ;;  %s363_s3 = inlined_call_operand.hbm [shape: f32[2,128], index: 3, kind: output, shape index: {}]  }
   0x1   :  { %9 = vsyncpa [#allocation7], 0 }
   0x2   :  { %10 = vsyncpa [#allocation5], 0  ;;  %s288_s12 = smov [#allocation3]   ;;  %s216_s16 = scalar_lea.hbm %s360_s0, 256 }
   0x3   :  { %s16_s13 = sshll.u32 %s288_s12, 4  ;;  %p217_p0 = scmp.ne.s32.totalorder %s360_s0, %s216_s16  ;;  %s17_s13 = int_to_ptr.vmem [resolvable:$true] %s16_s13 }
   0x4   :  { %p220_p1 = scmp.lt.u32.totalorder %s216_s16, %s360_s0 }
   0x6   :  { %p222_p2 = pnand %p220_p1, %p217_p0 }
   0x8   :  { %225 = shalt.err (!%p222_p2)
}
   0x9   :  { %s226_s21 = scalar_lea.vmem %s17_s13, 256  ;;  %p231_p4 = scmp.lt.s32.totalorder %s17_s13, %s17_s13 }
   0xa   :  { %p227_p3 = scmp.ne.s32.totalorder %s17_s13, %s226_s21  ;;  %p232_p5 = scmp.lt.s32.totalorder %s226_s21, %s226_s21 }
   0xc   :  { %p233_p6 = por %p232_p5, %p231_p4 }
   0xe   :  { %p234_p7 = pnand %p233_p6, %p227_p3 }
  0x10   :  { %237 = shalt.err (!%p234_p7)
}
  0x11   :  { %s289_s22 = smov 128   ;;  %s290_s23 = smov 8  }
  0x12   :  { %22 = dma.hbm_to_vmem [thread:$0]  %s360_s0, 256, %s17_s13, [#allocation4], %s289_s22, %s289_s22, %s290_s23  }
  0x13   :  { %s291_s26 = smov [#allocation6]   ;;  %s238_s30 = scalar_lea.hbm %s361_s1, 512 }
  0x14   :  { %s28_s27 = sshll.u32 %s291_s26, 4  ;;  %p239_p8 = scmp.ne.s32.totalorder %s361_s1, %s238_s30  ;;  %s29_s27 = int_to_ptr.vmem [resolvable:$true] %s28_s27 }
  0x15   :  { %p242_p9 = scmp.lt.u32.totalorder %s238_s30, %s361_s1 }
  0x17   :  { %p244_p10 = pnand %p242_p9, %p239_p8 }
  0x19   :  { %247 = shalt.err (!%p244_p10)
}
  0x1a   :  { %s248_s8 = scalar_lea.vmem %s29_s27, 512  ;;  %p253_p12 = scmp.lt.s32.totalorder %s29_s27, %s29_s27 }
  0x1b   :  { %p249_p11 = scmp.ne.s32.totalorder %s29_s27, %s248_s8  ;;  %p254_p13 = scmp.lt.s32.totalorder %s248_s8, %s248_s8 }
  0x1d   :  { %p255_p0 = por %p254_p13, %p253_p12 }
  0x1f   :  { %p256_p1 = pnand %p255_p0, %p249_p11 }
  0x21   :  { %259 = shalt.err (!%p256_p1)
}
  0x22   :  { %34 = dma.hbm_to_vmem [thread:$0]  %s361_s1, 512, %s29_s27, [#allocation7], %s289_s22, %s289_s22, %s290_s23  }
  0x23   :  { %282 = dma.done.wait [#allocation4], 256  }
  0x24   :  { %283 = vsyncadd [#allocation4], 4294967040 }
  0x25   :  { %284 = dma.done.wait [#allocation7], 512  }
  0x26   :  { %285 = vsyncadd [#allocation7], 4294966784  ;;  %vm47_vm0 = vcmask 254976   ;;  %v292_v0 = vmov 0.0|0.0   ;;  %v293_v1 = vmov 0.0   ;;  %vm294_vm1 = vmmov 0  }
  0x27   :  { %200 = vmatprep.subr.bf16.mxu0 %v292_v0  ;;  %48 = vst.msk [vmem:[#allocation2] sm:$0x3] %vm47_vm0, %v293_v1  ;;  %197 = vmatprep.mubr.msk.f32.mxu0 %vm294_vm1, %v293_v1  ;;  %vm52_vm2 = vcmask 261120   ;;  %v80_v2 = vld [vmem:[#allocation6] sm:$0xff]  ;;  %v81_v3 = vld [vmem:[#allocation6 + $0x8] sm:$0xff]  ;;  %v82_v4 = vld [vmem:[#allocation6 + $0x10] sm:$0xff] }
  0x28   :  { %v201_v5 = vpack.c.bf16 %v81_v3, %v80_v2  ;;  %v83_v6 = vld [vmem:[#allocation6 + $0x18] sm:$0xff]  ;;  %v49_v7 = vld [vmem:[#allocation3] sm:$0xff]  ;;  %vm69_vm3 = vcmask 1041409   ;;  %v182_v29 = vld [vmem:[%s362_s2] ss:$0 sm:$0xff]  ;;  %s295_s11 = smov [#allocation8]  }
  0x29   :  { %v50_v8 = vld [vmem:[#allocation3 + $0x8] sm:$0xff]  ;;  %v53_v9 = vsel %vm52_vm2, %v49_v7, 0.0  ;;  %v204_v11 = vpack.c.bf16 %v83_v6, %v82_v4  ;;  %s172_s12 = sshll.u32 %s295_s11, 4  ;;  %s173_s12 = int_to_ptr.vmem [resolvable:$true] %s172_s12 }
  0x2a   :  { %v60_v10 = vsel %vm52_vm2, %v50_v8, 0.0  ;;  %202 = vmatpush3.bf16.msra.mxu0 %v201_v5  ;;  %v54_v12 = vrot.slane %v53_v9, 4  ;;  %s260_s13 = scalar_lea.vmem %s173_s12, 32  ;;  %p265_p3 = scmp.lt.s32.totalorder %s173_s12, %s173_s12 }
  0x2b   :  { %v61_v13 = vrot.slane %v60_v10, 4  ;;  %203 = vmatprep.subr.bf16.mxu0 %v292_v0  ;;  %p261_p2 = scmp.ne.s32.totalorder %s173_s12, %s260_s13  ;;  %p266_p4 = scmp.lt.s32.totalorder %s260_s13, %s260_s13 }
  0x2c   :  { %v55_v14 = vadd.f32 %v54_v12, %v53_v9 }
  0x2d   :  { %v62_v15 = vadd.f32 %v61_v13, %v60_v10  ;;  %p267_p5 = por %p266_p4, %p265_p3 }
  0x2e   :  { %205 = vmatpush3.bf16.msra.mxu0 %v204_v11  ;;  %v56_v16 = vrot.slane %v55_v14, 2  ;;  %v51_v22 = vld [vmem:[#allocation2] sm:$0x3] }
  0x2f   :  { %v63_v17 = vrot.slane %v62_v15, 2  ;;  %p268_p6 = pnand %p267_p5, %p261_p2 }
  0x30   :  { %v57_v18 = vadd.f32 %v56_v16, %v55_v14 }
  0x31   :  { %v64_v19 = vadd.f32 %v63_v17, %v62_v15 }
  0x32   :  { %v58_v20 = vrot.slane %v57_v18, 1 }
  0x33   :  { %v65_v21 = vrot.slane %v64_v19, 1 }
  0x34   :  { %v59_v23 = vadd.f32 %v58_v20, %v57_v18 }
  0x35   :  { %v66_v24 = vadd.f32 %v65_v21, %v64_v19 }
  0x37   :  { %v70_v25 = vsel %vm69_vm3, %v66_v24, %v59_v23 }
  0x38   :  { %v72_v26 = vadd.f32 %v70_v25, %v51_v22 }
  0x3a   :  { %74 = vst.msk [vmem:[#allocation2] sm:$0x3] %vm47_vm0, %v72_v26 }
  0x41   :  { %v78_v27 = vld [vmem:[#allocation2] sm:$0x3] }
  0x42   :  { %v79_v28 = vmul.f32 0.125, %v78_v27 }
  0x44   :  { %198 = vmatmul.mubr.msk.f32.vlgmr.msra.gmra.mrb[0].mxu0 %vm52_vm2, %v79_v28 }
 0x117   :  { %v160_v30 = vpop.f32.mrb[0].mxu0 }
 0x118   :  { %v161_v31 = vadd.f32 %v182_v29, %v160_v30  ;;  %v199_v32 = vpop.f32.mrb[1].mxu0 }
 0x11a   :  { %214 = vtanh.f32 %v161_v31 }
 0x124   :  { %v215_v33 = vpop.eup %214 }
 0x125   :  { %165 = vst [vmem:[#allocation8] sm:$0x3] %v215_v33 }
 0x126   :  { %271 = shalt.err (!%p268_p6)
}
 0x127   :  { %s272_s2 = scalar_lea.hbm %s363_s3, 32 }
 0x128   :  { %p273_p7 = scmp.ne.s32.totalorder %s363_s3, %s272_s2  ;;  %p276_p8 = scmp.lt.u32.totalorder %s272_s2, %s363_s3 }
 0x12a   :  { %p278_p9 = pnand %p276_p8, %p273_p7 }
 0x12c   :  { %281 = shalt.err (!%p278_p9)
}
 0x12d   :  { %175 = dma.vmem_to_hbm [thread:$0]  %s173_s12, 32, %s363_s3, [#allocation5]  }
 0x12e   :  { %286 = dma.done.wait [#allocation5], 32  }
 0x12f   :  { %287 = vsyncadd [#allocation5], 4294967264 }
 0x130   :  { %179 = vsyncpa [#allocation4], 1 }
 0x131   :  { %180 = vsyncpa [#allocation7], 1 }
 0x132   :  { %181 = vsyncpa [#allocation5], 1 }

</bundles_post_ra>
